<compile_context>
chip_gen: v7x
topology: tpu7x:2x2x1
jax: 0.10.0
libtpu: 0.0.40
codegen_flags: <defaults>
</compile_context>

<pallas_src>
import functools

import jax
import jax.numpy as jnp
import numpy as np
from jax.experimental import pallas as pl
from jax.experimental.pallas import tpu as pltpu


def _transition_kernel(x_ref, sb_ref, a_ref, wt_ref, o_ref, pz_ref, *,
                       n_pairs, two_w, wh):
    # x_ref : (1, Cin, TS)   native dtype; TS = n_pairs * 2W flat NCHW spatial
    # sb_ref: (Cin, 2)  f32  [:,0] = folded BN scale, [:,1] = folded BN bias
    # a_ref : (2W, Wh)  bf16 2x2 avg-pool of ONE row pair as a matmul (0.25 folded)
    # wt_ref: (Cout, Cin) bf16 transposed 1x1 ConvTranspose weight
    # o_ref : (1, Cout, TS//4) activation dtype
    # pz_ref: (Cin, TS//4) bf16 VMEM scratch holding the pooled activations
    scale = sb_ref[:, 0:1]          # (Cin, 1) -> lane broadcast (hoisted)
    bias = sb_ref[:, 1:2]
    a = a_ref[...]                  # tiny, load once

    # Pool each 2-row group with the small (2W, Wh) matrix -> linear in TS.
    for t in range(n_pairs):        # static unroll; offsets are compile-time
        xt = x_ref[0, :, pl.ds(t * two_w, two_w)].astype(jnp.float32)  # (Cin, 2W)
        z = jnp.maximum(xt * scale + bias, 0.0).astype(jnp.bfloat16)   # BN + ReLU
        pz = jnp.dot(z, a, preferred_element_type=jnp.float32)         # (Cin, Wh)
        pz_ref[:, pl.ds(t * wh, wh)] = pz.astype(jnp.bfloat16)

    # 1x1 ConvTranspose == channel matmul on the 4x smaller pooled tensor; the
    # output block is lane-dense (TSo >= 128 lanes for tiled shapes).
    out = jnp.dot(wt_ref[...], pz_ref[...], preferred_element_type=jnp.float32)
    o_ref[0] = out.astype(o_ref.dtype)


def _vmem_budget_bytes():
    """Per-generation VMEM budget: ~48 MiB on v7x (64 MiB physical), up to
    96 MiB on v5e/v6e (128 MiB physical)."""
    try:
        cap = int(pltpu.get_tpu_info().vmem_capacity_bytes)
    except Exception:
        cap = 64 * 1024 * 1024
    return max(16 * 1024 * 1024, min(cap * 3 // 4, 96 * 1024 * 1024))


def _pick_spatial_tile(Hh, W, HW, itemsize, Cin, Cout, vmem_budget,
                       target_bytes=1 << 21):
    """Flat spatial tile TS = 2*W*m (m | Hh, i.e. whole 2-row groups).
    (8,128) legality on the last block dims of the flat input (TS) and output
    (TS//4) views: TS % 512 == 0 or TS == HW.  Prefer per-step input blocks
    near ~1-2 MiB (amortizes the ~0.35us/step cost) while leaving VMEM headroom
    for double buffering; fall back to the whole image."""
    two_w = 2 * W
    candidates = []
    for m in range(1, Hh + 1):
        if Hh % m:
            continue
        ts = two_w * m
        if ts % 512 and ts != HW:
            continue
        buf = ((2 * Cin * ts + 2 * Cout * (ts // 4)) * itemsize  # dbl-buffered i/o
               + Cin * (ts // 4) * 2                              # bf16 scratch
               + Cout * Cin * 2 + two_w * (W // 2) * 2)           # residents
        if buf > vmem_budget - (4 << 20) and ts != HW:
            continue
        candidates.append(ts)
    if not candidates:
        return HW
    return min(candidates, key=lambda ts: abs(Cin * ts * itemsize - target_bytes))


def transition_block1(x_nchw, gamma, beta, running_mean, running_var, conv_w,
                      eps=1e-5, spatial_tile=None):
    """Forward of TransitionBlock1 (eval-mode BN). x_nchw: (N, Cin, H, W)."""
    N, Cin, H, W = x_nchw.shape
    Cout = conv_w.shape[1]
    assert H % 2 == 0 and W % 2 == 0, "avg_pool2d(2) path here expects even H, W"
    Hh, Wh = H // 2, W // 2
    HW, HWo = H * W, Hh * Wh
    two_w = 2 * W

    vmem_budget = _vmem_budget_bytes()
    itemsize = jnp.dtype(x_nchw.dtype).itemsize
    if spatial_tile is None:
        TS = _pick_spatial_tile(Hh, W, HW, itemsize, Cin, Cout, vmem_budget)
    else:
        TS = int(spatial_tile)
        assert TS % two_w == 0 and HW % TS == 0, "tile must cover whole row pairs"
        assert TS % 512 == 0 or TS == HW, "tile must keep (8,128)-legal blocks"
    TSo = TS // 4
    n_pairs = TS // two_w
    n_sp = HW // TS

    # ---- glue (free reshapes / tiny params only; no full-tensor wrapper work) --
    x_flat = x_nchw.reshape(N, Cin, HW)            # free view, native dtype, NCHW

    inv_std = 1.0 / jnp.sqrt(running_var.astype(jnp.float32) + eps)
    scale = gamma.astype(jnp.float32) * inv_std
    bias = beta.astype(jnp.float32) - running_mean.astype(jnp.float32) * scale
    sb = jnp.stack([scale, bias], axis=1)          # (Cin, 2) f32

    wt = conv_w[:, :, 0, 0].T.astype(jnp.bfloat16)  # (Cout, Cin)

    # 2x2 avg pool of a single 2-row group (2W flat pixels -> Wh), 0.25 folded.
    j = np.arange(two_w)
    a_np = np.zeros((two_w, Wh), np.float32)
    a_np[j, (j % W) // 2] = 0.25
    a = jnp.asarray(a_np, dtype=jnp.bfloat16)       # 0.25 exact in bf16

    kernel = functools.partial(_transition_kernel, n_pairs=n_pairs,
                               two_w=two_w, wh=Wh)

    # TODO(synk): if input DMA is still exposed on v7x for small Cin, bump the
    #             x BlockSpec to pipeline_mode=pl.Buffered(3).
    out_flat = pl.pallas_call(
        kernel,
        out_shape=jax.ShapeDtypeStruct((N, Cout, HWo), x_nchw.dtype),
        grid=(N, n_sp),
        in_specs=[
            pl.BlockSpec((1, Cin, TS), lambda n, s: (n, 0, s)),
            pl.BlockSpec((Cin, 2), lambda n, s: (0, 0)),        # resident
            pl.BlockSpec((two_w, Wh), lambda n, s: (0, 0)),     # resident
            pl.BlockSpec((Cout, Cin), lambda n, s: (0, 0)),     # resident
        ],
        out_specs=pl.BlockSpec((1, Cout, TSo), lambda n, s: (n, 0, s)),
        scratch_shapes=[pltpu.VMEM((Cin, TSo), jnp.bfloat16)],
        compiler_params=pltpu.CompilerParams(
            dimension_semantics=("parallel", "parallel"),
            vmem_limit_bytes=vmem_budget,
        ),
    )(x_flat, sb, a, wt)

    # (N, Cout, Hh*Wh) -> (N, Cout, Hh, Wh): free reshape, already NCHW.
    return out_flat.reshape(N, Cout, Hh, Wh)


def _reference_forward(x, gamma, beta, rm, rv, conv_w, eps=1e-5):
    """Pure-JAX reference matching the PyTorch forward (eval-mode BN)."""
    xb = ((x - rm[None, :, None, None]) / jnp.sqrt(rv[None, :, None, None] + eps)
          * gamma[None, :, None, None] + beta[None, :, None, None])
    xr = jnp.maximum(xb, 0.0)
    # ConvTranspose2d k=1,s=1,p=0, no bias: out[n,co] = sum_ci x[n,ci] * w[ci,co]
    y = jnp.einsum('nchw,cd->ndhw', xr, conv_w[:, :, 0, 0])
    N, D, H, W = y.shape
    return y.reshape(N, D, H // 2, 2, W // 2, 2).mean(axis=(3, 5))


if __name__ == "__main__":
    base_key = jax.random.PRNGKey(0)

    def run_case(idx, N, Cin, Cout, H, W, spatial_tile=None):
        key = jax.random.fold_in(base_key, idx)
        k_x, k_g, k_b, k_m, k_v, k_w = jax.random.split(key, 6)
        x = jax.random.normal(k_x, (N, Cin, H, W), dtype=jnp.float32)
        gamma = jax.random.uniform(k_g, (Cin,), jnp.float32, 0.5, 1.5)
        beta = jax.random.normal(k_b, (Cin,), jnp.float32) * 0.1
        rm = jax.random.normal(k_m, (Cin,), jnp.float32) * 0.1
        rv = jax.random.uniform(k_v, (Cin,), jnp.float32, 0.5, 1.5)
        conv_w = jax.random.normal(k_w, (Cin, Cout, 1, 1), dtype=jnp.float32) * 0.1

        out = transition_block1(x, gamma, beta, rm, rv, conv_w,
                                spatial_tile=spatial_tile)
        out = jax.block_until_ready(out)
        ref = _reference_forward(x, gamma, beta, rm, rv, conv_w)
        assert out.shape == (N, Cout, H // 2, W // 2), out.shape
        # bf16 MXU operands with f32 accumulation -> relaxed tolerance.
        np.testing.assert_allclose(np.asarray(out), np.asarray(ref),
                                   rtol=2e-2, atol=2e-2)

    run_case(0, N=2, Cin=4, Cout=8, H=16, W=16)                      # whole-image tile
    run_case(1, N=2, Cin=8, Cout=16, H=32, W=32, spatial_tile=512)   # multi-step spatial grid
    print("KERNEL_OK")
</pallas_src>

<mosaic_0001>
module attributes {stable_mosaic.version = 11 : i64} {
  func.func @_transition_kernel(%arg0: i32, %arg1: i32, %arg2: memref<1x4x256xf32, #tpu.memory_space<vmem>>, %arg3: memref<4x2xf32, #tpu.memory_space<vmem>>, %arg4: memref<32x8xbf16, #tpu.memory_space<vmem>>, %arg5: memref<8x4xbf16, #tpu.memory_space<vmem>>, %arg6: memref<1x8x64xf32, #tpu.memory_space<vmem>>, %arg7: memref<4x64xbf16, #tpu.memory_space<vmem>>) attributes {dimension_semantics = [#tpu.dimension_semantics<parallel>, #tpu.dimension_semantics<parallel>], iteration_bounds = array<i64: 2, 1>, scalar_prefetch = 0 : i64, scratch_operands = 1 : i64, tpu.core_type = #tpu.core_type<tc>, window_params = [{transform_indices = @transform_0, window_bounds = array<i64: 1, 4, 256>}, {pipeline_mode = #tpu.pipeline_mode<synchronous>, transform_indices = @transform_1, window_bounds = array<i64: 4, 2>}, {pipeline_mode = #tpu.pipeline_mode<synchronous>, transform_indices = @transform_2, window_bounds = array<i64: 32, 8>}, {pipeline_mode = #tpu.pipeline_mode<synchronous>, transform_indices = @transform_3, window_bounds = array<i64: 8, 4>}, {transform_indices = @transform_4, window_bounds = array<i64: 1, 8, 64>}]} {
    %c0 = arith.constant 0 : index
    %c0_0 = arith.constant 0 : index
    %0 = vector.load %arg3[%c0, %c0_0] : memref<4x2xf32, #tpu.memory_space<vmem>>, vector<4x1xf32>
    %c0_1 = arith.constant 0 : index
    %c1 = arith.constant 1 : index
    %1 = vector.load %arg3[%c0_1, %c1] : memref<4x2xf32, #tpu.memory_space<vmem>>, vector<4x1xf32>
    %c0_2 = arith.constant 0 : index
    %c0_3 = arith.constant 0 : index
    %2 = vector.load %arg4[%c0_2, %c0_3] : memref<32x8xbf16, #tpu.memory_space<vmem>>, vector<32x8xbf16>
    %c0_4 = arith.constant 0 : index
    %c0_5 = arith.constant 0 : index
    %c0_6 = arith.constant 0 : index
    %3 = vector.load %arg2[%c0_4, %c0_5, %c0_6] : memref<1x4x256xf32, #tpu.memory_space<vmem>>, vector<1x4x32xf32>
    %4 = vector.shape_cast %3 : vector<1x4x32xf32> to vector<4x32xf32>
    %5 = vector.broadcast %0 : vector<4x1xf32> to vector<4x32xf32>
    %6 = arith.mulf %4, %5 : vector<4x32xf32>
    %7 = vector.broadcast %1 : vector<4x1xf32> to vector<4x32xf32>
    %8 = arith.addf %6, %7 : vector<4x32xf32>
    %cst = arith.constant 0.000000e+00 : f32
    %9 = vector.broadcast %cst : f32 to vector<4x32xf32>
    %10 = arith.maximumf %8, %9 : vector<4x32xf32>
    %11 = arith.truncf %10 : vector<4x32xf32> to vector<4x32xbf16>
    %cst_7 = arith.constant dense<0.000000e+00> : vector<4x8xf32>
    %12 = tpu.matmul %11, %2, %cst_7 {dimension_numbers = #tpu.dot_dimension_numbers<[1], [0], [0], [1], [0, 0, 1, 1], [], []>} : vector<4x32xbf16>, vector<32x8xbf16>, vector<4x8xf32> -> vector<4x8xf32>
    %13 = arith.truncf %12 : vector<4x8xf32> to vector<4x8xbf16>
    %c0_8 = arith.constant 0 : index
    %c0_9 = arith.constant 0 : index
    %14 = vector.load %arg7[%c0_8, %c0_9] : memref<4x64xbf16, #tpu.memory_space<vmem>>, vector<4x8xbf16>
    tpu.vector_store %arg7[%c0_8, %c0_9], %13 {strides = array<i32>} : memref<4x64xbf16, #tpu.memory_space<vmem>>, vector<4x8xbf16>,
    %c0_10 = arith.constant 0 : index
    %c0_11 = arith.constant 0 : index
    %c32 = arith.constant 32 : index
    %15 = vector.load %arg2[%c0_10, %c0_11, %c32] : memref<1x4x256xf32, #tpu.memory_space<vmem>>, vector<1x4x32xf32>
    %16 = vector.shape_cast %15 : vector<1x4x32xf32> to vector<4x32xf32>
    %17 = vector.broadcast %0 : vector<4x1xf32> to vector<4x32xf32>
    %18 = arith.mulf %16, %17 : vector<4x32xf32>
    %19 = vector.broadcast %1 : vector<4x1xf32> to vector<4x32xf32>
    %20 = arith.addf %18, %19 : vector<4x32xf32>
    %cst_12 = arith.constant 0.000000e+00 : f32
    %21 = vector.broadcast %cst_12 : f32 to vector<4x32xf32>
    %22 = arith.maximumf %20, %21 : vector<4x32xf32>
    %23 = arith.truncf %22 : vector<4x32xf32> to vector<4x32xbf16>
    %cst_13 = arith.constant dense<0.000000e+00> : vector<4x8xf32>
    %24 = tpu.matmul %23, %2, %cst_13 {dimension_numbers = #tpu.dot_dimension_numbers<[1], [0], [0], [1], [0, 0, 1, 1], [], []>} : vector<4x32xbf16>, vector<32x8xbf16>, vector<4x8xf32> -> vector<4x8xf32>
    %25 = arith.truncf %24 : vector<4x8xf32> to vector<4x8xbf16>
    %c0_14 = arith.constant 0 : index
    %c8 = arith.constant 8 : index
    %26 = vector.load %arg7[%c0_14, %c8] : memref<4x64xbf16, #tpu.memory_space<vmem>>, vector<4x8xbf16>
    tpu.vector_store %arg7[%c0_14, %c8], %25 {strides = array<i32>} : memref<4x64xbf16, #tpu.memory_space<vmem>>, vector<4x8xbf16>,
    %c0_15 = arith.constant 0 : index
    %c0_16 = arith.constant 0 : index
    %c64 = arith.constant 64 : index
    %27 = vector.load %arg2[%c0_15, %c0_16, %c64] : memref<1x4x256xf32, #tpu.memory_space<vmem>>, vector<1x4x32xf32>
    %28 = vector.shape_cast %27 : vector<1x4x32xf32> to vector<4x32xf32>
    %29 = vector.broadcast %0 : vector<4x1xf32> to vector<4x32xf32>
    %30 = arith.mulf %28, %29 : vector<4x32xf32>
    %31 = vector.broadcast %1 : vector<4x1xf32> to vector<4x32xf32>
    %32 = arith.addf %30, %31 : vector<4x32xf32>
    %cst_17 = arith.constant 0.000000e+00 : f32
    %33 = vector.broadcast %cst_17 : f32 to vector<4x32xf32>
    %34 = arith.maximumf %32, %33 : vector<4x32xf32>
    %35 = arith.truncf %34 : vector<4x32xf32> to vector<4x32xbf16>
    %cst_18 = arith.constant dense<0.000000e+00> : vector<4x8xf32>
    %36 = tpu.matmul %35, %2, %cst_18 {dimension_numbers = #tpu.dot_dimension_numbers<[1], [0], [0], [1], [0, 0, 1, 1], [], []>} : vector<4x32xbf16>, vector<32x8xbf16>, vector<4x8xf32> -> vector<4x8xf32>
    %37 = arith.truncf %36 : vector<4x8xf32> to vector<4x8xbf16>
    %c0_19 = arith.constant 0 : index
    %c16 = arith.constant 16 : index
    %38 = vector.load %arg7[%c0_19, %c16] : memref<4x64xbf16, #tpu.memory_space<vmem>>, vector<4x8xbf16>
    tpu.vector_store %arg7[%c0_19, %c16], %37 {strides = array<i32>} : memref<4x64xbf16, #tpu.memory_space<vmem>>, vector<4x8xbf16>,
    %c0_20 = arith.constant 0 : index
    %c0_21 = arith.constant 0 : index
    %c96 = arith.constant 96 : index
    %39 = vector.load %arg2[%c0_20, %c0_21, %c96] : memref<1x4x256xf32, #tpu.memory_space<vmem>>, vector<1x4x32xf32>
    %40 = vector.shape_cast %39 : vector<1x4x32xf32> to vector<4x32xf32>
    %41 = vector.broadcast %0 : vector<4x1xf32> to vector<4x32xf32>
    %42 = arith.mulf %40, %41 : vector<4x32xf32>
    %43 = vector.broadcast %1 : vector<4x1xf32> to vector<4x32xf32>
    %44 = arith.addf %42, %43 : vector<4x32xf32>
    %cst_22 = arith.constant 0.000000e+00 : f32
    %45 = vector.broadcast %cst_22 : f32 to vector<4x32xf32>
    %46 = arith.maximumf %44, %45 : vector<4x32xf32>
    %47 = arith.truncf %46 : vector<4x32xf32> to vector<4x32xbf16>
    %cst_23 = arith.constant dense<0.000000e+00> : vector<4x8xf32>
    %48 = tpu.matmul %47, %2, %cst_23 {dimension_numbers = #tpu.dot_dimension_numbers<[1], [0], [0], [1], [0, 0, 1, 1], [], []>} : vector<4x32xbf16>, vector<32x8xbf16>, vector<4x8xf32> -> vector<4x8xf32>
    %49 = arith.truncf %48 : vector<4x8xf32> to vector<4x8xbf16>
    %c0_24 = arith.constant 0 : index
    %c24 = arith.constant 24 : index
    %50 = vector.load %arg7[%c0_24, %c24] : memref<4x64xbf16, #tpu.memory_space<vmem>>, vector<4x8xbf16>
    tpu.vector_store %arg7[%c0_24, %c24], %49 {strides = array<i32>} : memref<4x64xbf16, #tpu.memory_space<vmem>>, vector<4x8xbf16>,
    %c0_25 = arith.constant 0 : index
    %c0_26 = arith.constant 0 : index
    %c128 = arith.constant 128 : index
    %51 = vector.load %arg2[%c0_25, %c0_26, %c128] : memref<1x4x256xf32, #tpu.memory_space<vmem>>, vector<1x4x32xf32>
    %52 = vector.shape_cast %51 : vector<1x4x32xf32> to vector<4x32xf32>
    %53 = vector.broadcast %0 : vector<4x1xf32> to vector<4x32xf32>
    %54 = arith.mulf %52, %53 : vector<4x32xf32>
    %55 = vector.broadcast %1 : vector<4x1xf32> to vector<4x32xf32>
    %56 = arith.addf %54, %55 : vector<4x32xf32>
    %cst_27 = arith.constant 0.000000e+00 : f32
    %57 = vector.broadcast %cst_27 : f32 to vector<4x32xf32>
    %58 = arith.maximumf %56, %57 : vector<4x32xf32>
    %59 = arith.truncf %58 : vector<4x32xf32> to vector<4x32xbf16>
    %cst_28 = arith.constant dense<0.000000e+00> : vector<4x8xf32>
    %60 = tpu.matmul %59, %2, %cst_28 {dimension_numbers = #tpu.dot_dimension_numbers<[1], [0], [0], [1], [0, 0, 1, 1], [], []>} : vector<4x32xbf16>, vector<32x8xbf16>, vector<4x8xf32> -> vector<4x8xf32>
    %61 = arith.truncf %60 : vector<4x8xf32> to vector<4x8xbf16>
    %c0_29 = arith.constant 0 : index
    %c32_30 = arith.constant 32 : index
    %62 = vector.load %arg7[%c0_29, %c32_30] : memref<4x64xbf16, #tpu.memory_space<vmem>>, vector<4x8xbf16>
    tpu.vector_store %arg7[%c0_29, %c32_30], %61 {strides = array<i32>} : memref<4x64xbf16, #tpu.memory_space<vmem>>, vector<4x8xbf16>,
    %c0_31 = arith.constant 0 : index
    %c0_32 = arith.constant 0 : index
    %c160 = arith.constant 160 : index
    %63 = vector.load %arg2[%c0_31, %c0_32, %c160] : memref<1x4x256xf32, #tpu.memory_space<vmem>>, vector<1x4x32xf32>
    %64 = vector.shape_cast %63 : vector<1x4x32xf32> to vector<4x32xf32>
    %65 = vector.broadcast %0 : vector<4x1xf32> to vector<4x32xf32>
    %66 = arith.mulf %64, %65 : vector<4x32xf32>
    %67 = vector.broadcast %1 : vector<4x1xf32> to vector<4x32xf32>
    %68 = arith.addf %66, %67 : vector<4x32xf32>
    %cst_33 = arith.constant 0.000000e+00 : f32
    %69 = vector.broadcast %cst_33 : f32 to vector<4x32xf32>
    %70 = arith.maximumf %68, %69 : vector<4x32xf32>
    %71 = arith.truncf %70 : vector<4x32xf32> to vector<4x32xbf16>
    %cst_34 = arith.constant dense<0.000000e+00> : vector<4x8xf32>
    %72 = tpu.matmul %71, %2, %cst_34 {dimension_numbers = #tpu.dot_dimension_numbers<[1], [0], [0], [1], [0, 0, 1, 1], [], []>} : vector<4x32xbf16>, vector<32x8xbf16>, vector<4x8xf32> -> vector<4x8xf32>
    %73 = arith.truncf %72 : vector<4x8xf32> to vector<4x8xbf16>
    %c0_35 = arith.constant 0 : index
    %c40 = arith.constant 40 : index
    %74 = vector.load %arg7[%c0_35, %c40] : memref<4x64xbf16, #tpu.memory_space<vmem>>, vector<4x8xbf16>
    tpu.vector_store %arg7[%c0_35, %c40], %73 {strides = array<i32>} : memref<4x64xbf16, #tpu.memory_space<vmem>>, vector<4x8xbf16>,
    %c0_36 = arith.constant 0 : index
    %c0_37 = arith.constant 0 : index
    %c192 = arith.constant 192 : index
    %75 = vector.load %arg2[%c0_36, %c0_37, %c192] : memref<1x4x256xf32, #tpu.memory_space<vmem>>, vector<1x4x32xf32>
    %76 = vector.shape_cast %75 : vector<1x4x32xf32> to vector<4x32xf32>
    %77 = vector.broadcast %0 : vector<4x1xf32> to vector<4x32xf32>
    %78 = arith.mulf %76, %77 : vector<4x32xf32>
    %79 = vector.broadcast %1 : vector<4x1xf32> to vector<4x32xf32>
    %80 = arith.addf %78, %79 : vector<4x32xf32>
    %cst_38 = arith.constant 0.000000e+00 : f32
    %81 = vector.broadcast %cst_38 : f32 to vector<4x32xf32>
    %82 = arith.maximumf %80, %81 : vector<4x32xf32>
    %83 = arith.truncf %82 : vector<4x32xf32> to vector<4x32xbf16>
    %cst_39 = arith.constant dense<0.000000e+00> : vector<4x8xf32>
    %84 = tpu.matmul %83, %2, %cst_39 {dimension_numbers = #tpu.dot_dimension_numbers<[1], [0], [0], [1], [0, 0, 1, 1], [], []>} : vector<4x32xbf16>, vector<32x8xbf16>, vector<4x8xf32> -> vector<4x8xf32>
    %85 = arith.truncf %84 : vector<4x8xf32> to vector<4x8xbf16>
    %c0_40 = arith.constant 0 : index
    %c48 = arith.constant 48 : index
    %86 = vector.load %arg7[%c0_40, %c48] : memref<4x64xbf16, #tpu.memory_space<vmem>>, vector<4x8xbf16>
    tpu.vector_store %arg7[%c0_40, %c48], %85 {strides = array<i32>} : memref<4x64xbf16, #tpu.memory_space<vmem>>, vector<4x8xbf16>,
    %c0_41 = arith.constant 0 : index
    %c0_42 = arith.constant 0 : index
    %c224 = arith.constant 224 : index
    %87 = vector.load %arg2[%c0_41, %c0_42, %c224] : memref<1x4x256xf32, #tpu.memory_space<vmem>>, vector<1x4x32xf32>
    %88 = vector.shape_cast %87 : vector<1x4x32xf32> to vector<4x32xf32>
    %89 = vector.broadcast %0 : vector<4x1xf32> to vector<4x32xf32>
    %90 = arith.mulf %88, %89 : vector<4x32xf32>
    %91 = vector.broadcast %1 : vector<4x1xf32> to vector<4x32xf32>
    %92 = arith.addf %90, %91 : vector<4x32xf32>
    %cst_43 = arith.constant 0.000000e+00 : f32
    %93 = vector.broadcast %cst_43 : f32 to vector<4x32xf32>
    %94 = arith.maximumf %92, %93 : vector<4x32xf32>
    %95 = arith.truncf %94 : vector<4x32xf32> to vector<4x32xbf16>
    %cst_44 = arith.constant dense<0.000000e+00> : vector<4x8xf32>
    %96 = tpu.matmul %95, %2, %cst_44 {dimension_numbers = #tpu.dot_dimension_numbers<[1], [0], [0], [1], [0, 0, 1, 1], [], []>} : vector<4x32xbf16>, vector<32x8xbf16>, vector<4x8xf32> -> vector<4x8xf32>
    %97 = arith.truncf %96 : vector<4x8xf32> to vector<4x8xbf16>
    %c0_45 = arith.constant 0 : index
    %c56 = arith.constant 56 : index
    %98 = vector.load %arg7[%c0_45, %c56] : memref<4x64xbf16, #tpu.memory_space<vmem>>, vector<4x8xbf16>
    tpu.vector_store %arg7[%c0_45, %c56], %97 {strides = array<i32>} : memref<4x64xbf16, #tpu.memory_space<vmem>>, vector<4x8xbf16>,
    %c0_46 = arith.constant 0 : index
    %c0_47 = arith.constant 0 : index
    %99 = vector.load %arg5[%c0_46, %c0_47] : memref<8x4xbf16, #tpu.memory_space<vmem>>, vector<8x4xbf16>
    %c0_48 = arith.constant 0 : index
    %c0_49 = arith.constant 0 : index
    %100 = vector.load %arg7[%c0_48, %c0_49] : memref<4x64xbf16, #tpu.memory_space<vmem>>, vector<4x64xbf16>
    %cst_50 = arith.constant dense<0.000000e+00> : vector<8x64xf32>
    %101 = tpu.matmul %99, %100, %cst_50 {dimension_numbers = #tpu.dot_dimension_numbers<[1], [0], [0], [1], [0, 0, 1, 1], [], []>} : vector<8x4xbf16>, vector<4x64xbf16>, vector<8x64xf32> -> vector<8x64xf32>
    %c0_51 = arith.constant 0 : index
    %c0_52 = arith.constant 0 : index
    %c0_53 = arith.constant 0 : index
    %102 = vector.load %arg6[%c0_51, %c0_52, %c0_53] : memref<1x8x64xf32, #tpu.memory_space<vmem>>, vector<1x8x64xf32>
    %103 = vector.shape_cast %102 : vector<1x8x64xf32> to vector<8x64xf32>
    %104 = vector.shape_cast %101 : vector<8x64xf32> to vector<1x8x64xf32>
    tpu.vector_store %arg6[%c0_51, %c0_52, %c0_53], %104 {strides = array<i32>} : memref<1x8x64xf32, #tpu.memory_space<vmem>>, vector<1x8x64xf32>,
    return
  }
  func.func @transform_0(%arg0: i32, %arg1: i32) -> (i32, i32, i32) {
    %c0_i32 = arith.constant 0 : i32
    %c0_i32_0 = arith.constant 0 : i32
    return %arg0, %c0_i32, %arg1 : i32, i32, i32
  }
  func.func @transform_1(%arg0: i32, %arg1: i32) -> (i32, i32) {
    %c0_i32 = arith.constant 0 : i32
    %c0_i32_0 = arith.constant 0 : i32
    %c0_i32_1 = arith.constant 0 : i32
    return %c0_i32, %c0_i32_0 : i32, i32
  }
  func.func @transform_2(%arg0: i32, %arg1: i32) -> (i32, i32) {
    %c0_i32 = arith.constant 0 : i32
    %c0_i32_0 = arith.constant 0 : i32
    %c0_i32_1 = arith.constant 0 : i32
    return %c0_i32, %c0_i32_0 : i32, i32
  }
  func.func @transform_3(%arg0: i32, %arg1: i32) -> (i32, i32) {
    %c0_i32 = arith.constant 0 : i32
    %c0_i32_0 = arith.constant 0 : i32
    %c0_i32_1 = arith.constant 0 : i32
    return %c0_i32, %c0_i32_0 : i32, i32
  }
  func.func @transform_4(%arg0: i32, %arg1: i32) -> (i32, i32, i32) {
    %c0_i32 = arith.constant 0 : i32
    %c0_i32_0 = arith.constant 0 : i32
    return %arg0, %c0_i32, %arg1 : i32, i32, i32
  }
}

</mosaic_0001>

<bundles_post_ra>
// kernel: tpu_custom_call.1
= control target key start
LH: loop header
LB: loop body
LE: loop exit
PB: predicated region body
PF: predicated region fallthrough
CT: control target
= control target key end

     0   :  { %9 = vsyncpa [#allocation4], 0  ;;  %s1401_s0 = inlined_call_operand.vmem [shape: f32[2,4,256], index: 0, kind: input, shape index: {}]   ;;  %s1402_s1 = inlined_call_operand.vmem [shape: f32[4,2], index: 1, kind: input, shape index: {}]   ;;  %s1403_s2 = inlined_call_operand.vmem [shape: bf16[32,8], index: 2, kind: input, shape index: {}]   ;;  %s1404_s3 = inlined_call_operand.vmem [shape: bf16[8,4], index: 3, kind: input, shape index: {}]   ;;  %s1405_s4 = inlined_call_operand.hbm [shape: f32[2,8,64], index: 4, kind: output, shape index: {}]  }
   0x1   :  { %11 = vsyncpa [#allocation4 + $0x1], 0  ;;  %s1211_s15 = smov 0   ;;  %s1213_s16 = smov 0  }
   0x2   :  { %s1215_s17 = smov 0   ;;  %s1217_s18 = smov 0  }
   0x3   :  { %s1219_s19 = smov 0   ;;  %s1221_s20 = smov 0  }
   0x4 LB: > { %s898_s21 = sadd.s32 4294967295, %s1169_s20   ;;  %s899_s22 = sadd.s32 4294967294, %s1169_s20   ;;  %s1169_s20 = sphi %s1221_s20, %s17_s20   ;;  %s1165_s19 = sphi %s1219_s19, %s1412_s19   ;;  %s1161_s18 = sphi %s1217_s18, %s1411_s18   ;;  %s1157_s17 = sphi %s1215_s17, %s1410_s17   ;;  %s1153_s16 = sphi %s1213_s16, %s1409_s16   ;;  %s1149_s15 = sphi %s1211_s15, %s1408_s15  }
   0x5   : > { %s29_s23 = sadd.s32 1, %s1165_s19  ;;  %s129_s24 = sadd.s32 1, %s1157_s17 }
   0x6   : > { %p31_p0 = scmp.ge.s32.totalorder %s29_s23, 2  ;;  %p139_p1 = scmp.ne.s32.totalorder %s1157_s17, %s1153_s16 }
   0x7   : > { %p140_p2 = scmp.eq.s32.totalorder %s898_s21, 1  ;;  %p145_p3 = scmp.ne.s32.totalorder %s1153_s16, %s1149_s15 }
   0x8   : > { %s1414_s23 = smov (%p31_p0, %s29_s23), 0  ;;  %p146_p5 = scmp.eq.s32.totalorder %s899_s22, 1 }
   0x9   : > { %p1251_p4 = por %p140_p2, %p139_p1  ;;  %s124_s26 = ssub.s32 %s1165_s19, %s1414_s23 }
   0xa   : > { %p902_p6 = scmp.ge.s32.totalorder %s1169_s20, 1  ;;  %p127_p7 = scmp.eq.s32.totalorder %s124_s26, 0 }
   0xb   : > { %p1258_p8 = por %p146_p5, %p145_p3  ;;  %p186_p9 = scmp.lt.s32.totalorder %s1169_s20, 3 }
   0xc   : > { %s1264_s28 = scalar_select %p127_p7, %s1157_s17, %s129_s24  }
   0xd   : > { %p187_p10 = pnand %p902_p6, %p186_p9 }
   0xe   : > { %v227_v0 = vld [vmem:[%s1402_s1] sm:$0xf] (!%p187_p10)  ;;  %v1171_v1 = vmov (!%p187_p10), 0   ;;  %v1172_v3 = vmov (!%p187_p10), 0.0   ;;  %v1173_v4 = vmov (!%p187_p10), 1   ;;  %v1283_v5 = vld [vmem:[%s1403_s2 + $0x8] sm:$0xff] (!%p187_p10)   ;;  %v361_v61 = vlaneseq (!%p187_p10) }
   0xf   : > { %190 = sbr.rel (%p187_p10) target bundleno = 864 (0x360), region = 36  ;;  %1087 = vset.pattern.permute.xlu0 (!%p187_p10), %v1171_v1  ;;  %v1272_v2 = vld [vmem:[%s1403_s2] sm:$0xff] (!%p187_p10)   ;;  %948 = vmatprep.subr.bf16.mxu0 (!%p187_p10), %v1172_v3  ;;  %vm1174_vm0 = vmmov (!%p187_p10), 0   ;;  %p217_p11 = scmp.lt.s32.totalorder (!%p187_p10), %s1161_s18, 1  ;;  %vm258_vm1 = vcmask (!%p187_p10), 261120   ;;  %vm303_vm2 = vcmask (!%p187_p10), 58368  }
  0x10   : > { %235 = vperm.xlu0 (!%p187_p10), %1087, %v227_v0   ;;  %949 = vmatpush3.bf16.msra.mxu0 (!%p187_p10), %v1272_v2  ;;  %s1175_s14 = smov (!%p187_p10), 96   ;;  %s1176_s21 = smov (!%p187_p10), 32   ;;  %v1178_v59 = vmov (!%p187_p10), 1983009808   ;;  %v362_v63 = vshrl.u32 (!%p187_p10), %v361_v61, 7  ;;  %vm368_vm3 = vcmask (!%p187_p10), 123968  }
  0x11   : > { %956 = vmatprep.subr.bf16.mxu1 (!%p187_p10), %v1172_v3  ;;  %950 = vmatprep.subr.bf16.mxu0 (!%p187_p10), %v1172_v3  ;;  %s1177_s22 = smov (!%p187_p10), 64   ;;  %v359_v60 = vunpack.c.l.s4 (!%p187_p10), %v1178_v59  ;;  %s1179_s24 = smov (!%p187_p10), 8   ;;  %vm433_vm4 = vcmask (!%p187_p10), 189568   ;;  %vm498_vm5 = vcmask (!%p187_p10), 255168   ;;  %vm560_vm6 = vcmask (!%p187_p10), 320768  }
  0x12   : > { %957 = vmatpush3.bf16.msra.mxu1 (!%p187_p10), %v1272_v2  ;;  %952 = vmatprep.mubr.msk.bf16.mxu0 (!%p187_p10), %vm1174_vm0, %v1172_v3  ;;  %s1180_s26 = smov (!%p187_p10), 16   ;;  %s1181_s29 = smov (!%p187_p10), 24   ;;  %vm625_vm7 = vcmask (!%p187_p10), 386368   ;;  %vm690_vm8 = vcmask (!%p187_p10), 451968   ;;  %vm755_vm9 = vcmask (!%p187_p10), 517568   ;;  %vm763_vm10 = vcmask (!%p187_p10), 1041408  }
  0x13   : > { %958 = vmatprep.subr.bf16.mxu1 (!%p187_p10), %v1172_v3  ;;  %960 = vmatprep.mubr.msk.bf16.mxu1 (!%p187_p10), %vm1174_vm0, %v1172_v3  ;;  %v360_v62 = vunpack.c.0.s8 (!%p187_p10), %v359_v60  ;;  %s1182_s30 = smov (!%p187_p10), 40   ;;  %s1183_s5 = smov (!%p187_p10), 48   ;;  %vm759_vm11 = vcmask (!%p187_p10), 31744   ;;  %vm807_vm12 = vcmask (!%p187_p10), 523264  }
  0x14   : > { %1088 = vset.pattern.permute.xlu0 (!%p187_p10), %v1173_v4  ;;  %951 = vmatpush3.bf16.msra.mxu0 (!%p187_p10), %v1283_v5  ;;  %s1184_s6 = smov (!%p187_p10), 56   ;;  %s918_s11 = sshll.u32 (!%p187_p10), %s1161_s18, 7 }
  0x15   : > { %240 = vperm.xlu0 (!%p187_p10), %1088, %v227_v0   ;;  %964 = vmatprep.subr.bf16.mxu0 (!%p187_p10), %v1172_v3  ;;  %v363_v0 = vsub.s32 (!%p187_p10), %v360_v62, %v362_v63 }
  0x16   : > { %959 = vmatpush3.bf16.msra.mxu1 %v1283_v5  ;;  %s218_s9 = scalar_select %p217_p11, %s1161_s18, 1 }
  0x17   : > { %972 = vmatprep.subr.bf16.mxu1 %v1172_v3  ;;  %s1185_s18 = smov [#allocation3]  }
  0x18   : > { %s921_s10 = sshll.u32 %s218_s9, 3  ;;  %s213_s9 = sand.u32 1, %s1153_s16  }
  0x19   : > { %s224_s13 = scalar_lea.vmem %s1401_s0, %s921_s10  ;;  %s903_s10 = sshll.u32 %s213_s9, 3 }
  0x1a   : > { %v500_v6 = vld [vmem:[%s224_s13 + $0x4] sm:$0xf]  ;;  %v305_v9 = vld [vmem:[%s224_s13] sm:$0xf]  ;;  %s215_s12 = scalar_lea.vmem [#allocation3], %s903_s10 }
  0x1b   : > { %v562_v8 = vld [vmem:[%s224_s13 + $0x4] sm:$0xf]  ;;  %v232_v10 = vld [vmem:[%s224_s13] sm:$0xf] }
  0x1c   : > { %v692_v11 = vld [vmem:[%s224_s13 + $0x4] sm:$0xf]  ;;  %v370_v12 = vld [vmem:[%s224_s13] sm:$0xf] }
  0x1d   : > { %v435_v18 = vld [vmem:[%s224_s13] sm:$0xf]  ;;  %v627_v32 = vld [vmem:[%s224_s13 + $0x4] sm:$0xf]  ;;  %s824_s13 = sshll.u32 %s215_s12, 4  ;;  %s1356_s13 = int_to_ptr.vmem [resolvable:$true] %s824_s13 }
  0x8f   : > { %v236_v7 = vpop.permute.xlu0 %235 }
  0x90   : > { %v501_v13 = vmul.f32 %v500_v6, %v236_v7  ;;  %v563_v14 = vmul.f32 %v562_v8, %v236_v7  ;;  %v306_v15 = vmul.f32 %v305_v9, %v236_v7  ;;  %v238_v16 = vmul.f32 %v236_v7, %v232_v10 }
  0x91   : > { %v693_v17 = vmul.f32 %v692_v11, %v236_v7  ;;  %v371_v20 = vmul.f32 %v370_v12, %v236_v7  ;;  %v436_v26 = vmul.f32 %v435_v18, %v236_v7  ;;  %v628_v37 = vmul.f32 %v627_v32, %v236_v7 }
  0x94   : > { %v241_v19 = vpop.permute.xlu0 %240 }
  0x95   : > { %v564_v21 = vadd.f32 %v563_v14, %v241_v19  ;;  %v307_v22 = vadd.f32 %v306_v15, %v241_v19  ;;  %v243_v23 = vadd.f32 %v241_v19, %v238_v16  ;;  %v694_v24 = vadd.f32 %v693_v17, %v241_v19 }
  0x96   : > { %v372_v25 = vadd.f32 %v371_v20, %v241_v19  ;;  %v437_v31 = vadd.f32 %v436_v26, %v241_v19  ;;  %v629_v41 = vadd.f32 %v628_v37, %v241_v19  ;;  %v502_v46 = vadd.f32 %v501_v13, %v241_v19 }
  0x97   : > { %v565_v27 = vmax.f32 %v564_v21, 0.0  ;;  %v308_v28 = vmax.f32 %v307_v22, 0.0  ;;  %v244_v29 = vmax.f32 %v243_v23, 0.0  ;;  %v695_v30 = vmax.f32 %v694_v24, 0.0 }
  0x98   : > { %v373_v36 = vmax.f32 %v372_v25, 0.0  ;;  %v438_v40 = vmax.f32 %v437_v31, 0.0  ;;  %v630_v43 = vmax.f32 %v629_v41, 0.0  ;;  %v503_v48 = vmax.f32 %v502_v46, 0.0 }
  0x99   : > { %v566_v33 = vpack.c.bf16 %v565_v27, %v565_v27  ;;  %v309_v34 = vpack.c.bf16 %v308_v28, %v308_v28  ;;  %v245_v35 = vpack.c.bf16 %v244_v29, %v244_v29  ;;  %v696_v38 = vpack.c.bf16 %v695_v30, %v695_v30 }
  0x9a   : > { %v374_v39 = vpack.c.bf16 %v373_v36, %v373_v36  ;;  %v439_v42 = vpack.c.bf16 %v438_v40, %v438_v40  ;;  %v631_v44 = vpack.c.bf16 %v630_v43, %v630_v43  ;;  %v504_v50 = vpack.c.bf16 %v503_v48, %v503_v48 }
  0x9b   : > { %568 = vrot.lane.b32.xlu0 %v566_v33, %s1175_s14  ;;  %311 = vrot.lane.b32.xlu1 %v309_v34, %s1175_s14 }
  0x9c   : > { %953 = vmatmul.mubr.msk.bf16.vlgmr.msra.gmra.mrb[0].mxu0 %vm258_vm1, %v245_v35 }
  0x9d   : > { %965 = vmatpush3.bf16.msra.mxu0 %v1272_v2  ;;  %968 = vmatprep.mubr.msk.bf16.mxu0 %vm1174_vm0, %v1172_v3 }
  0x9e   : > { %966 = vmatprep.subr.bf16.mxu0 %v1172_v3 }
  0x9f   : > { %698 = vrot.lane.b32.xlu0 %v696_v38, %s1176_s21  ;;  %376 = vrot.lane.b32.xlu1 %v374_v39, %s1177_s22 }
  0xa1   : > { %967 = vmatpush3.bf16.msra.mxu0 %v1283_v5 }
  0xa2   : > { %980 = vmatprep.subr.bf16.mxu0 %v1172_v3 }
  0xa3   : > { %441 = vrot.lane.b32.xlu1 %v439_v42, %s1176_s21 }
  0xa7   : > { %633 = vrot.lane.b32.xlu1 %v631_v44, %s1177_s22  ;;  %s1354_s22 = scalar_lea.hbm %s1405_s4, %s918_s11 }
 0x10d   : > { %v312_v45 = vpop.permute.xlu1 %311  ;;  %v569_v51 = vpop.permute.xlu0 %568 }
 0x10e   : > { %961 = vmatmul.mubr.msk.bf16.vlgmr.msra.gmra.mrb[0].mxu1 %vm258_vm1, %v312_v45 }
 0x10f   : > { %973 = vmatpush3.bf16.msra.mxu1 %v1272_v2  ;;  %976 = vmatprep.mubr.msk.bf16.mxu1 %vm1174_vm0, %v1172_v3 }
 0x110   : > { %974 = vmatprep.subr.bf16.mxu1 %v1172_v3 }
 0x111   : > { %v377_v47 = vpop.permute.xlu1 %376  ;;  %v699_v53 = vpop.permute.xlu0 %698 }
 0x112   : > { %969 = vmatmul.mubr.msk.bf16.vlgmr.msra.gmra.mrb[4].mxu0 %vm258_vm1, %v377_v47 }
 0x113   : > { %975 = vmatpush3.bf16.msra.mxu1 %v1283_v5  ;;  %981 = vmatpush3.bf16.msra.mxu0 %v1272_v2 }
 0x114   : > { %982 = vmatprep.subr.bf16.mxu0 %v1172_v3  ;;  %988 = vmatprep.subr.bf16.mxu1 %v1172_v3 }
 0x115   : > { %v442_v49 = vpop.permute.xlu1 %441  ;;  %984 = vmatprep.mubr.msk.bf16.mxu0 %vm1174_vm0, %v1172_v3 }
 0x116   : > { %977 = vmatmul.mubr.msk.bf16.vlgmr.msra.gmra.mrb[4].mxu1 %vm258_vm1, %v442_v49 }
 0x117   : > { %983 = vmatpush3.bf16.msra.mxu0 %v1283_v5  ;;  %989 = vmatpush3.bf16.msra.mxu1 %v1272_v2 }
 0x118   : > { %990 = vmatprep.subr.bf16.mxu1 %v1172_v3  ;;  %996 = vmatprep.subr.bf16.mxu0 %v1172_v3 }
 0x119   : > { %992 = vmatprep.mubr.msk.bf16.mxu1 %vm1174_vm0, %v1172_v3  ;;  %v634_v52 = vpop.permute.xlu1 %633 }
 0x11a   : > { %985 = vmatmul.mubr.msk.bf16.vlgmr.msra.gmra.mrb[8].mxu0 %vm258_vm1, %v504_v50 }
 0x11b   : > { %991 = vmatpush3.bf16.msra.mxu1 %v1283_v5  ;;  %997 = vmatpush3.bf16.msra.mxu0 %v1272_v2 }
 0x11c   : > { %998 = vmatprep.subr.bf16.mxu0 %v1172_v3  ;;  %1004 = vmatprep.subr.bf16.mxu1 %v1172_v3 }
 0x11d   : > { %1000 = vmatprep.mubr.msk.bf16.mxu0 %vm1174_vm0, %v1172_v3 }
 0x11e   : > { %993 = vmatmul.mubr.msk.bf16.vlgmr.msra.gmra.mrb[8].mxu1 %vm258_vm1, %v569_v51 }
 0x11f   : > { %999 = vmatpush3.bf16.msra.mxu0 %v1283_v5  ;;  %1005 = vmatpush3.bf16.msra.mxu1 %v1272_v2 }
 0x120   : > { %1006 = vmatprep.subr.bf16.mxu1 %v1172_v3  ;;  %1008 = vmatprep.mubr.msk.bf16.mxu1 %vm1174_vm0, %v1172_v3 }
 0x121   : > { %1012 = vmatprep.subr.bf16.mxu0 %v1172_v3 }
 0x122   : > { %1001 = vmatmul.mubr.msk.bf16.vlgmr.msra.gmra.mrb[12].mxu0 %vm258_vm1, %v634_v52  ;;  %v757_v52 = vld [vmem:[%s1404_s3] sm:$0xf] }
 0x123   : > { %1007 = vmatpush3.bf16.msra.mxu1 %v1283_v5  ;;  %1014 = vmatprep.mubr.msk.bf16.mxu0 %vm1174_vm0, %v1172_v3 }
 0x126   : > { %1009 = vmatmul.mubr.msk.bf16.vlgmr.msra.gmra.mrb[12].mxu1 %vm258_vm1, %v699_v53 }
 0x16f   : > { %v296_v54 = vpop.f32.mrb[0].mxu0 }
 0x170   : > { %v302_v55 = vpack.c.bf16 %v296_v54, %v296_v54  ;;  %v954_v56 = vpop.f32.mrb[1].mxu0 }
 0x171   : > { %v299_v57 = vpop.f32.mrb[2].mxu0 }
 0x172   : > { %304 = vst.msk [vmem:[#allocation2] sm:$0x3] %vm303_vm2, %v302_v55  ;;  %v955_v58 = vpop.f32.mrb[3].mxu0 }
 0x1e1   : > { %v350_v1 = vpop.f32.mrb[0].mxu1 }
 0x1e2   : > { %v356_v2 = vpack.c.bf16 %v350_v1, %v350_v1  ;;  %v962_v4 = vpop.f32.mrb[1].mxu1 }
 0x1e3   : > { %v353_v3 = vpop.f32.mrb[2].mxu1 }
 0x1e4   : > { %v364_v5 = vrot.slane %v356_v2, %v363_v0  ;;  %v963_v6 = vpop.f32.mrb[3].mxu1 }
 0x1e5   : > { %v415_v7 = vpop.f32.mrb[4].mxu0 }
 0x1e6   : > { %v421_v8 = vpack.c.bf16 %v415_v7, %v415_v7  ;;  %365 = vrot.lane.b32.xlu1 %v364_v5, %s1179_s24  ;;  %v970_v9 = vpop.f32.mrb[5].mxu0  ;;  %s810_s24 = scalar_lea.sflag [#allocation4], %s213_s9 }
 0x1e7   : > { %v418_v10 = vpop.f32.mrb[6].mxu0 }
 0x1e8   : > { %v429_v11 = vrot.slane %v421_v8, %v363_v0  ;;  %v971_v12 = vpop.f32.mrb[7].mxu0 }
 0x1e9   : > { %v480_v13 = vpop.f32.mrb[4].mxu1 }
 0x1ea   : > { %v486_v14 = vpack.c.bf16 %v480_v13, %v480_v13  ;;  %v978_v15 = vpop.f32.mrb[5].mxu1  ;;  %430 = vrot.lane.b32.xlu0 %v429_v11, %s1180_s26  ;;  %s1091_s26 = scalar_lea.vmem %s1356_s13, 128 }
 0x1eb   : > { %v483_v16 = vpop.f32.mrb[6].mxu1  ;;  %p1092_p12 = scmp.ne.s32.totalorder %s1356_s13, %s1091_s26 }
 0x1ec   : > { %v494_v17 = vrot.slane %v486_v14, %v363_v0  ;;  %v979_v18 = vpop.f32.mrb[7].mxu1 }
 0x1ed   : > { %v542_v19 = vpop.f32.mrb[8].mxu0  ;;  %p1093_p13 = pnand %p1092_p12, %p1251_p4 }
 0x1ee   : > { %v548_v20 = vpack.c.bf16 %v542_v19, %v542_v19  ;;  %495 = vrot.lane.b32.xlu1 %v494_v17, %s1181_s29  ;;  %v986_v21 = vpop.f32.mrb[9].mxu0  ;;  %s1095_s29 = sshll.u32 %s1185_s18, 4  ;;  %s1096_s29 = int_to_ptr.vmem [resolvable:$false] %s1095_s29 }
 0x1ef   : > { %v545_v22 = vpop.f32.mrb[10].mxu0  ;;  %p1094_p0 = pneg %p1093_p13  ;;  %p1098_p1 = scmp.lt.s32.totalorder %s1356_s13, %s1096_s29 }
 0x1f0   : > { %v556_v23 = vrot.slane %v548_v20, %v363_v0  ;;  %v987_v24 = vpop.f32.mrb[11].mxu0 }
 0x1f1   : > { %v607_v25 = vpop.f32.mrb[8].mxu1 }
 0x1f2   : > { %v613_v26 = vpack.c.bf16 %v607_v25, %v607_v25  ;;  %v994_v27 = vpop.f32.mrb[9].mxu1  ;;  %557 = vrot.lane.b32.xlu0 %v556_v23, %s1176_s21 }
 0x1f3   : > { %v610_v28 = vpop.f32.mrb[10].mxu1 }
 0x1f4   : > { %v621_v29 = vrot.slane %v613_v26, %v363_v0  ;;  %v995_v30 = vpop.f32.mrb[11].mxu1 }
 0x1f5   : > { %v672_v31 = vpop.f32.mrb[12].mxu0 }
 0x1f6   : > { %v678_v32 = vpack.c.bf16 %v672_v31, %v672_v31  ;;  %622 = vrot.lane.b32.xlu1 %v621_v29, %s1182_s30  ;;  %v1002_v33 = vpop.f32.mrb[13].mxu0  ;;  %s1097_s30 = scalar_lea.vmem %s1096_s29, 256 }
 0x1f7   : > { %v675_v34 = vpop.f32.mrb[14].mxu0  ;;  %p1099_p2 = scmp.lt.s32.totalorder %s1097_s30, %s1091_s26 }
 0x1f8   : > { %v686_v35 = vrot.slane %v678_v32, %v363_v0  ;;  %v1003_v36 = vpop.f32.mrb[15].mxu0 }
 0x1f9   : > { %v737_v37 = vpop.f32.mrb[12].mxu1  ;;  %p1100_p3 = por %p1099_p2, %p1098_p1 }
 0x1fa   : > { %v743_v38 = vpack.c.bf16 %v737_v37, %v737_v37  ;;  %v1010_v39 = vpop.f32.mrb[13].mxu1  ;;  %687 = vrot.lane.b32.xlu0 %v686_v35, %s1183_s5 }
 0x1fb   : > { %v740_v40 = vpop.f32.mrb[14].mxu1  ;;  %p1101_p5 = pnand %p1100_p3, %p1094_p0 }
 0x1fc   : > { %v751_v41 = vrot.slane %v743_v38, %v363_v0  ;;  %v1011_v42 = vpop.f32.mrb[15].mxu1 }
 0x1fe   : > { %752 = vrot.lane.b32.xlu1 %v751_v41, %s1184_s6 }
 0x258   : > { %v366_v43 = vpop.permute.xlu1 %365 }
 0x259   : > { %369 = vst.msk [vmem:[#allocation2] sm:$0x3] %vm368_vm3, %v366_v43 }
 0x25c   : > { %v431_v44 = vpop.permute.xlu0 %430 }
 0x25d   : > { %434 = vst.msk [vmem:[#allocation2] sm:$0x3] %vm433_vm4, %v431_v44 }
 0x260   : > { %v496_v45 = vpop.permute.xlu1 %495 }
 0x261   : > { %499 = vst.msk [vmem:[#allocation2] sm:$0x3] %vm498_vm5, %v496_v45 }
 0x264   : > { %v558_v46 = vpop.permute.xlu0 %557 }
 0x265   : > { %561 = vst.msk [vmem:[#allocation2] sm:$0x3] %vm560_vm6, %v558_v46 }
 0x268   : > { %v623_v47 = vpop.permute.xlu1 %622 }
 0x269   : > { %626 = vst.msk [vmem:[#allocation2] sm:$0x3] %vm625_vm7, %v623_v47 }
 0x26c   : > { %v688_v48 = vpop.permute.xlu0 %687 }
 0x26d   : > { %691 = vst.msk [vmem:[#allocation2] sm:$0x3] %vm690_vm8, %v688_v48 }
 0x270   : > { %v753_v49 = vpop.permute.xlu1 %752 }
 0x271   : > { %756 = vst.msk [vmem:[#allocation2] sm:$0x3] %vm755_vm9, %v753_v49 }
 0x278   : > { %v758_v50 = vld [vmem:[#allocation2] sm:$0x3] }
 0x279   : > { %v765_v51 = vsel %vm763_vm10, %v758_v50, 0 }
 0x27a   : > { %1013 = vmatpush3.bf16.msra.mxu0 %v765_v51 }
 0x27d   : > { %1015 = vmatmul.mubr.msk.bf16.vlgmr.msra.gmra.mrb[16].mxu0 %vm759_vm11, %v757_v52 }
 0x350   : > { %v801_v53 = vpop.f32.mrb[16].mxu0 }
 0x351   : > { %808 = vst.msk [vmem:[%s215_s12] sm:$0xff] %vm807_vm12, %v801_v53  ;;  %v1016_v54 = vpop.f32.mrb[17].mxu0 }
 0x352   : > { %v804_v55 = vpop.f32.mrb[18].mxu0 }
 0x353   : > { %1104 = shalt.err (!%p1101_p5)
}
 0x354   : > { %s1105_s5 = scalar_lea.hbm %s1354_s22, 128  ;;  %s1109_s8 = scalar_lea.hbm %s1405_s4, 256 }
 0x355   : > { %p1106_p6 = scmp.ne.s32.totalorder %s1354_s22, %s1105_s5  ;;  %p1110_p10 = scmp.lt.u32.totalorder %s1354_s22, %s1405_s4 }
 0x356   : > { %p1111_p11 = scmp.lt.u32.totalorder %s1109_s8, %s1105_s5  ;;  %p1113_p13 = scmp.lt.u32.totalorder %s1105_s5, %s1354_s22 }
 0x357   : > { %p1107_p7 = pnand %p1106_p6, %p1251_p4 }
 0x358   : > { %p1112_p12 = por %p1111_p11, %p1110_p10 }
 0x359   : > { %p1108_p9 = pneg %p1107_p7 }
 0x35a   : > { %p1114_p0 = por %p1113_p13, %p1112_p12 }
 0x35c   : > { %p1115_p1 = pnand %p1114_p0, %p1108_p9 }
 0x35e   : > { %1118 = shalt.err (!%p1115_p1)
}
 0x35f   : > { %1018 = dma.vmem_to_hbm [thread:$0]  (%p1251_p4), %s1356_s13, 128, %s1354_s22, %s810_s24   ;;  %v1017_v56 = vpop.f32.mrb[19].mxu0 }
 0x360 PF: > { %p1024_p2 = scmp.ge.s32.totalorder %s1169_s20, 2  ;;  %s836_s11 = sand.u32 1, %s1149_s15  }
 0x361   : > { %s837_s12 = scalar_lea.sflag [#allocation4], %s836_s11 }
 0x362   : > { %p1021_p3 = pnand %p1024_p2, %p1258_p8 }
 0x364   : > { %1144 = dma.done.wait (!%p1021_p3), %s837_s12, 128  }
 0x365   : > { %1146 = vsyncadd (!%p1021_p3), %s837_s12, 4294967168  ;;  %s17_s20 = sadd.s32 1, %s1169_s20   ;;  %s1408_s15 = smov %s1153_s16 }
 0x366   : > { %p14_p5 = scmp.ge.s32.totalorder %s17_s20, 4   ;;  %s1409_s16 = smov %s1157_s17 }
 0x367   : > { %s1410_s17 = smov %s1264_s28  ;;  %s1411_s18 = smov %s1165_s19 }
 0x368   : > { %s1412_s19 = smov %s1414_s23  ;;  %16 = sbr.rel (!%p14_p5) target bundleno = 4 (0x4), region = 71 }
 0x36f   :  { %842 = vsyncpa [#allocation4], 1 }
 0x370   :  { %844 = vsyncpa [#allocation4 + $0x1], 1 }

</bundles_post_ra>
